<compile_context>
chip_gen: v7x
topology: tpu7x:2x2x1
jax: 0.10.0
libtpu: 0.0.40
codegen_flags: <defaults>
</compile_context>

<pallas_src>
import functools

import jax
import jax.numpy as jnp
from jax.experimental import pallas as pl
from jax.experimental.pallas import tpu as pltpu

_MIB = 1024 * 1024
_DEFAULT_VMEM_LIMIT = 48 * _MIB


def _gelu_tanh(x):
    # GELU with tanh approximation (matches nn.GELU(approximate='tanh')).
    c0 = 0.7978845608028654  # sqrt(2/pi)
    return 0.5 * x * (1.0 + jnp.tanh(c0 * (x + 0.044715 * (x * x * x))))


def _round_up(x, m):
    return ((x + m - 1) // m) * m


def _default_tile_m():
    # v6e: 128 MiB VMEM + cheap grid steps -> go big.  v5e (16 MiB scoped
    # default, compute-bound) and v7x (64 MiB physical VMEM, 2 TCs) stay <=512.
    try:
        kind = jax.devices()[0].device_kind.lower()
    except Exception:
        return 512
    return 1024 if "v6" in kind else 512


def _pick_k_chunks(h2):
    # Chunk the stage-2 contraction (H/2) so the GELU epilogue of chunk k+1 can
    # overlap the MXU accumulation of chunk k.  Chunks must stay 128-lane
    # aligned (slicing the stage-1 result at non-128 offsets forces relayouts).
    # TODO(synk): PixArt's H=1152 gives H2=576 (not a multiple of 256), so the
    # overlap path falls back to a single chunk there.
    for k in (4, 2):
        if h2 % (k * 128) == 0:
            return k
    return 1


def _adaptive_modulator_kernel(
    c_ref,      # (TM, H)     input tile, native dtype
    w1_ref,     # (H, H//2)   shared_proj weight (in, out), native dtype
    b1_ref,     # (1, H//2)   shared_proj bias, f32
    wm_ref,     # (H//2, H)   proj_mul weight, native dtype
    bm_ref,     # (1, H)      proj_mul bias, f32
    wa_ref,     # (H//2, H)   proj_add weight, native dtype
    ba_ref,     # (1, H)      proj_add bias, f32
    gamma_ref,  # (TM, H)     output tile
    beta_ref,   # (TM, H)     output tile
    *, k_chunks,
):
    # Stage 1: native-dtype MXU matmul, f32 accumulation; epilogue in f32.
    h = jnp.dot(c_ref[...], w1_ref[...], preferred_element_type=jnp.float32)
    h = h + b1_ref[...]

    h2 = h.shape[-1]
    ck = h2 // k_chunks
    acc_g = None
    acc_b = None
    # Statically unrolled; no data dependence between GELU of chunk k+1 and the
    # stage-2 dots of chunk k, so VPU/EUP work overlaps MXU accumulation.
    for k in range(k_chunks):
        lo, hi = k * ck, (k + 1) * ck
        a_k = _gelu_tanh(h[:, lo:hi]).astype(c_ref.dtype)
        g_k = jnp.dot(a_k, wm_ref[lo:hi, :], preferred_element_type=jnp.float32)
        b_k = jnp.dot(a_k, wa_ref[lo:hi, :], preferred_element_type=jnp.float32)
        acc_g = g_k if acc_g is None else acc_g + g_k
        acc_b = b_k if acc_b is None else acc_b + b_k

    gamma_ref[...] = (acc_g + bm_ref[...]).astype(gamma_ref.dtype)
    beta_ref[...] = (acc_b + ba_ref[...]).astype(beta_ref.dtype)


def prepare_params(w1, b1, wm, bm, wa, ba, compute_dtype):
    """One-time parameter prep (hoisted out of the per-call wrapper).

    Casts the matmul weights to the activation dtype (native MXU operands) and
    reshapes the biases to (1, out) f32 rows for the f32 epilogue.  Call once
    and reuse the result across diffusion sampling steps."""
    return (
        jnp.asarray(w1, compute_dtype),
        jnp.asarray(b1, jnp.float32).reshape(1, -1),
        jnp.asarray(wm, compute_dtype),
        jnp.asarray(bm, jnp.float32).reshape(1, -1),
        jnp.asarray(wa, compute_dtype),
        jnp.asarray(ba, jnp.float32).reshape(1, -1),
    )


@functools.partial(
    jax.jit,
    static_argnames=("tile_m", "single_buffer_weights", "vmem_limit_bytes"),
)
def _adaptive_modulator_impl(c, w1c, b1f, wmc, bmf, wac, baf, *, tile_m,
                             single_buffer_weights, vmem_limit_bytes):
    B, N, H = c.shape
    H2 = w1c.shape[1]
    M = B * N

    # Clamp the row tile to the 8-aligned problem size; the last grid tile may
    # be partial (no jnp.pad copy) — Pallas masks the edge stores.
    tm = min(_round_up(tile_m, 8), _round_up(M, 8))
    num_tiles = pl.cdiv(M, tm)

    c2 = c.reshape(M, H)
    k_chunks = _pick_k_chunks(H2)

    row_in = pl.BlockSpec((tm, H), lambda i: (i, 0))
    row_out = pl.BlockSpec((tm, H), lambda i: (i, 0))

    def const_spec(shape):
        # Grid-invariant operands: single-buffer them (they never change across
        # grid steps), halving their VMEM footprint.
        if single_buffer_weights:
            return pl.BlockSpec(shape, lambda i: (0, 0),
                                pipeline_mode=pl.Buffered(1))
        return pl.BlockSpec(shape, lambda i: (0, 0))

    kernel = functools.partial(_adaptive_modulator_kernel, k_chunks=k_chunks)

    gamma, beta = pl.pallas_call(
        kernel,
        out_shape=(jax.ShapeDtypeStruct((M, H), c.dtype),
                   jax.ShapeDtypeStruct((M, H), c.dtype)),
        grid_spec=pltpu.PrefetchScalarGridSpec(
            num_scalar_prefetch=0,
            grid=(num_tiles,),
            in_specs=[
                row_in,                   # c tile
                const_spec(w1c.shape),    # W_shared (H, H2)
                const_spec(b1f.shape),    # b_shared (1, H2)
                const_spec(wmc.shape),    # W_mul (H2, H)
                const_spec(bmf.shape),    # b_mul (1, H)
                const_spec(wac.shape),    # W_add (H2, H)
                const_spec(baf.shape),    # b_add (1, H)
            ],
            out_specs=[row_out, row_out],
        ),
        compiler_params=pltpu.CompilerParams(
            dimension_semantics=("parallel",),
            vmem_limit_bytes=vmem_limit_bytes,
        ),
    )(c2, w1c, b1f, wmc, bmf, wac, baf)

    return gamma.reshape(B, N, H), beta.reshape(B, N, H)


def adaptive_modulator(c, params, *, tile_m=None, single_buffer_weights=True,
                       vmem_limit_bytes=_DEFAULT_VMEM_LIMIT):
    """c: (B, N, H); params: output of prepare_params -> (gamma, beta)."""
    if tile_m is None:
        tile_m = _default_tile_m()
    return _adaptive_modulator_impl(
        c, *params, tile_m=tile_m,
        single_buffer_weights=single_buffer_weights,
        vmem_limit_bytes=vmem_limit_bytes)


def init_params(key, hidden_size, dtype=jnp.float32, zero_init_proj=True):
    """Parameter init mirroring the module.

    shared_proj: PyTorch Linear default init (uniform(-1/sqrt(in), 1/sqrt(in))).
    proj_mul / proj_add: zero-init (per init.zeros_) when zero_init_proj=True;
    random Linear-default init otherwise (for numerically meaningful tests).
    Weights are stored (in_features, out_features)."""
    h, h2 = hidden_size, hidden_size // 2
    k1, k2, k3, k4, k5, k6 = jax.random.split(key, 6)
    bound1 = 1.0 / (h ** 0.5)
    w1 = jax.random.uniform(k1, (h, h2), dtype, -bound1, bound1)
    b1 = jax.random.uniform(k2, (h2,), dtype, -bound1, bound1)
    if zero_init_proj:
        wm = jnp.zeros((h2, h), dtype)
        bm = jnp.zeros((h,), dtype)
        wa = jnp.zeros((h2, h), dtype)
        ba = jnp.zeros((h,), dtype)
    else:
        bound2 = 1.0 / (h2 ** 0.5)
        wm = jax.random.uniform(k3, (h2, h), dtype, -bound2, bound2)
        bm = jax.random.uniform(k4, (h,), dtype, -bound2, bound2)
        wa = jax.random.uniform(k5, (h2, h), dtype, -bound2, bound2)
        ba = jax.random.uniform(k6, (h,), dtype, -bound2, bound2)
    return w1, b1, wm, bm, wa, ba


def _reference(c, w1, b1, wm, bm, wa, ba):
    """Pure-JAX f32 reference (weights quantized to c.dtype to match the kernel)."""
    hi = jax.lax.Precision.HIGHEST
    dt = c.dtype
    qw = lambda w: w.astype(dt).astype(jnp.float32)
    cf = c.astype(jnp.float32)
    actv = _gelu_tanh(jnp.dot(cf, qw(w1), precision=hi) + b1.astype(jnp.float32))
    gamma = jnp.dot(actv, qw(wm), precision=hi) + bm.astype(jnp.float32)
    beta = jnp.dot(actv, qw(wa), precision=hi) + ba.astype(jnp.float32)
    return gamma, beta


if __name__ == "__main__":
    root = jax.random.PRNGKey(0)

    def run(c, raw_params, **kw):
        prepped = prepare_params(*raw_params, compute_dtype=c.dtype)
        try:
            g, b = adaptive_modulator(c, prepped, **kw)
        except Exception:
            # Fallback for jax versions / configs where pipeline_mode=pl.Buffered(1)
            # on a BlockSpec or the explicit vmem limit is unsupported.
            g, b = adaptive_modulator(c, prepped, single_buffer_weights=False,
                                      vmem_limit_bytes=None, **kw)
        return jax.block_until_ready(g), jax.block_until_ready(b)

    # --- Case 1: tiny f32 shape, single partial tile (M=18 rows, block of 24;
    # exercises the pad-free masked-edge path), default tile_m / vmem limit.
    B, N, H = 2, 9, 32
    kc, kp = jax.random.split(jax.random.fold_in(root, 1))
    c = jax.random.normal(kc, (B, N, H), jnp.float32)
    params = init_params(kp, H, zero_init_proj=False)
    gamma, beta = run(c, params)
    g_ref, b_ref = _reference(c, *params)
    assert gamma.shape == (B, N, H) and beta.shape == (B, N, H)
    assert jnp.allclose(gamma.astype(jnp.float32), g_ref, atol=5e-3, rtol=5e-3)
    assert jnp.allclose(beta.astype(jnp.float32), b_ref, atol=5e-3, rtol=5e-3)

    # Faithful zero-init of proj_mul/proj_add (as in the PyTorch module):
    # gamma and beta must be exactly zero.
    params0 = init_params(kp, H, zero_init_proj=True)
    g0, b0 = run(c, params0)
    assert jnp.all(g0 == 0) and jnp.all(b0 == 0)

    # --- Case 2: bf16, multi-tile grid with a partial last tile
    # (M=600, tile_m=256 -> 3 tiles) and the chunked stage-2 overlap path
    # (H2=256 -> 2 chunks of 128 lanes).
    B, N, H = 2, 300, 512
    kc, kp = jax.random.split(jax.random.fold_in(root, 2))
    c = jax.random.normal(kc, (B, N, H), jnp.float32).astype(jnp.bfloat16)
    params = init_params(kp, H, zero_init_proj=False)
    gamma, beta = run(c, params, tile_m=256)
    g_ref, b_ref = _reference(c, *params)
    assert jnp.allclose(gamma.astype(jnp.float32), g_ref, atol=5e-2, rtol=5e-2)
    assert jnp.allclose(beta.astype(jnp.float32), b_ref, atol=5e-2, rtol=5e-2)

    print("KERNEL_OK")
</pallas_src>

<mosaic_0001>
module attributes {stable_mosaic.version = 11 : i64} {
  func.func @_adaptive_modulator_kernel(%arg0: i32, %arg1: memref<24x32xf32, #tpu.memory_space<vmem>>, %arg2: memref<32x16xf32, #tpu.memory_space<vmem>>, %arg3: memref<1x16xf32, #tpu.memory_space<vmem>>, %arg4: memref<16x32xf32, #tpu.memory_space<vmem>>, %arg5: memref<1x32xf32, #tpu.memory_space<vmem>>, %arg6: memref<16x32xf32, #tpu.memory_space<vmem>>, %arg7: memref<1x32xf32, #tpu.memory_space<vmem>>, %arg8: memref<24x32xf32, #tpu.memory_space<vmem>>, %arg9: memref<24x32xf32, #tpu.memory_space<vmem>>) attributes {dimension_semantics = [#tpu.dimension_semantics<parallel>], iteration_bounds = array<i64: 1>, scalar_prefetch = 0 : i64, scratch_operands = 0 : i64, tpu.core_type = #tpu.core_type<tc>, window_params = [{transform_indices = @transform_0, window_bounds = array<i64: 24, 32>}, {pipeline_mode = #tpu.pipeline_mode<synchronous>, transform_indices = @transform_1, window_bounds = array<i64: 32, 16>}, {pipeline_mode = #tpu.pipeline_mode<synchronous>, transform_indices = @transform_2, window_bounds = array<i64: 1, 16>}, {pipeline_mode = #tpu.pipeline_mode<synchronous>, transform_indices = @transform_3, window_bounds = array<i64: 16, 32>}, {pipeline_mode = #tpu.pipeline_mode<synchronous>, transform_indices = @transform_4, window_bounds = array<i64: 1, 32>}, {pipeline_mode = #tpu.pipeline_mode<synchronous>, transform_indices = @transform_5, window_bounds = array<i64: 16, 32>}, {pipeline_mode = #tpu.pipeline_mode<synchronous>, transform_indices = @transform_6, window_bounds = array<i64: 1, 32>}, {transform_indices = @transform_7, window_bounds = array<i64: 24, 32>}, {transform_indices = @transform_8, window_bounds = array<i64: 24, 32>}]} {
    %c0 = arith.constant 0 : index
    %c0_0 = arith.constant 0 : index
    %0 = vector.load %arg1[%c0, %c0_0] : memref<24x32xf32, #tpu.memory_space<vmem>>, vector<24x32xf32>
    %c0_1 = arith.constant 0 : index
    %c0_2 = arith.constant 0 : index
    %1 = vector.load %arg2[%c0_1, %c0_2] : memref<32x16xf32, #tpu.memory_space<vmem>>, vector<32x16xf32>
    %cst = arith.constant dense<0.000000e+00> : vector<24x16xf32>
    %2 = tpu.matmul %0, %1, %cst {dimension_numbers = #tpu.dot_dimension_numbers<[1], [0], [0], [1], [0, 0, 1, 1], [], []>} : vector<24x32xf32>, vector<32x16xf32>, vector<24x16xf32> -> vector<24x16xf32>
    %c0_3 = arith.constant 0 : index
    %c0_4 = arith.constant 0 : index
    %3 = vector.load %arg3[%c0_3, %c0_4] : memref<1x16xf32, #tpu.memory_space<vmem>>, vector<1x16xf32>
    %4 = vector.broadcast %3 : vector<1x16xf32> to vector<24x16xf32>
    %5 = arith.addf %2, %4 : vector<24x16xf32>
    %cst_5 = arith.constant 5.000000e-01 : f32
    %6 = vector.broadcast %cst_5 : f32 to vector<24x16xf32>
    %7 = arith.mulf %6, %5 : vector<24x16xf32>
    %8 = arith.mulf %5, %5 : vector<24x16xf32>
    %9 = arith.mulf %8, %5 : vector<24x16xf32>
    %cst_6 = arith.constant 4.471500e-02 : f32
    %10 = vector.broadcast %cst_6 : f32 to vector<24x16xf32>
    %11 = arith.mulf %10, %9 : vector<24x16xf32>
    %12 = arith.addf %5, %11 : vector<24x16xf32>
    %cst_7 = arith.constant 0.797884583 : f32
    %13 = vector.broadcast %cst_7 : f32 to vector<24x16xf32>
    %14 = arith.mulf %13, %12 : vector<24x16xf32>
    %15 = math.tanh %14 : vector<24x16xf32>
    %cst_8 = arith.constant 1.000000e+00 : f32
    %16 = vector.broadcast %cst_8 : f32 to vector<24x16xf32>
    %17 = arith.addf %16, %15 : vector<24x16xf32>
    %18 = arith.mulf %7, %17 : vector<24x16xf32>
    %c0_9 = arith.constant 0 : index
    %c0_10 = arith.constant 0 : index
    %19 = vector.load %arg4[%c0_9, %c0_10] : memref<16x32xf32, #tpu.memory_space<vmem>>, vector<16x32xf32>
    %cst_11 = arith.constant dense<0.000000e+00> : vector<24x32xf32>
    %20 = tpu.matmul %18, %19, %cst_11 {dimension_numbers = #tpu.dot_dimension_numbers<[1], [0], [0], [1], [0, 0, 1, 1], [], []>} : vector<24x16xf32>, vector<16x32xf32>, vector<24x32xf32> -> vector<24x32xf32>
    %c0_12 = arith.constant 0 : index
    %c0_13 = arith.constant 0 : index
    %21 = vector.load %arg6[%c0_12, %c0_13] : memref<16x32xf32, #tpu.memory_space<vmem>>, vector<16x32xf32>
    %cst_14 = arith.constant dense<0.000000e+00> : vector<24x32xf32>
    %22 = tpu.matmul %18, %21, %cst_14 {dimension_numbers = #tpu.dot_dimension_numbers<[1], [0], [0], [1], [0, 0, 1, 1], [], []>} : vector<24x16xf32>, vector<16x32xf32>, vector<24x32xf32> -> vector<24x32xf32>
    %c0_15 = arith.constant 0 : index
    %c0_16 = arith.constant 0 : index
    %23 = vector.load %arg5[%c0_15, %c0_16] : memref<1x32xf32, #tpu.memory_space<vmem>>, vector<1x32xf32>
    %24 = vector.broadcast %23 : vector<1x32xf32> to vector<24x32xf32>
    %25 = arith.addf %20, %24 : vector<24x32xf32>
    %c0_17 = arith.constant 0 : index
    %c0_18 = arith.constant 0 : index
    %26 = vector.load %arg8[%c0_17, %c0_18] : memref<24x32xf32, #tpu.memory_space<vmem>>, vector<24x32xf32>
    tpu.vector_store %arg8[%c0_17, %c0_18], %25 {strides = array<i32>} : memref<24x32xf32, #tpu.memory_space<vmem>>, vector<24x32xf32>,
    %c0_19 = arith.constant 0 : index
    %c0_20 = arith.constant 0 : index
    %27 = vector.load %arg7[%c0_19, %c0_20] : memref<1x32xf32, #tpu.memory_space<vmem>>, vector<1x32xf32>
    %28 = vector.broadcast %27 : vector<1x32xf32> to vector<24x32xf32>
    %29 = arith.addf %22, %28 : vector<24x32xf32>
    %c0_21 = arith.constant 0 : index
    %c0_22 = arith.constant 0 : index
    %30 = vector.load %arg9[%c0_21, %c0_22] : memref<24x32xf32, #tpu.memory_space<vmem>>, vector<24x32xf32>
    tpu.vector_store %arg9[%c0_21, %c0_22], %29 {strides = array<i32>} : memref<24x32xf32, #tpu.memory_space<vmem>>, vector<24x32xf32>,
    return
  }
  func.func @transform_0(%arg0: i32) -> (i32, i32) {
    %c0_i32 = arith.constant 0 : i32
    %c0_i32_0 = arith.constant 0 : i32
    return %arg0, %c0_i32 : i32, i32
  }
  func.func @transform_1(%arg0: i32) -> (i32, i32) {
    %c0_i32 = arith.constant 0 : i32
    %c0_i32_0 = arith.constant 0 : i32
    %c0_i32_1 = arith.constant 0 : i32
    return %c0_i32, %c0_i32_0 : i32, i32
  }
  func.func @transform_2(%arg0: i32) -> (i32, i32) {
    %c0_i32 = arith.constant 0 : i32
    %c0_i32_0 = arith.constant 0 : i32
    %c0_i32_1 = arith.constant 0 : i32
    return %c0_i32, %c0_i32_0 : i32, i32
  }
  func.func @transform_3(%arg0: i32) -> (i32, i32) {
    %c0_i32 = arith.constant 0 : i32
    %c0_i32_0 = arith.constant 0 : i32
    %c0_i32_1 = arith.constant 0 : i32
    return %c0_i32, %c0_i32_0 : i32, i32
  }
  func.func @transform_4(%arg0: i32) -> (i32, i32) {
    %c0_i32 = arith.constant 0 : i32
    %c0_i32_0 = arith.constant 0 : i32
    %c0_i32_1 = arith.constant 0 : i32
    return %c0_i32, %c0_i32_0 : i32, i32
  }
  func.func @transform_5(%arg0: i32) -> (i32, i32) {
    %c0_i32 = arith.constant 0 : i32
    %c0_i32_0 = arith.constant 0 : i32
    %c0_i32_1 = arith.constant 0 : i32
    return %c0_i32, %c0_i32_0 : i32, i32
  }
  func.func @transform_6(%arg0: i32) -> (i32, i32) {
    %c0_i32 = arith.constant 0 : i32
    %c0_i32_0 = arith.constant 0 : i32
    %c0_i32_1 = arith.constant 0 : i32
    return %c0_i32, %c0_i32_0 : i32, i32
  }
  func.func @transform_7(%arg0: i32) -> (i32, i32) {
    %c0_i32 = arith.constant 0 : i32
    %c0_i32_0 = arith.constant 0 : i32
    return %arg0, %c0_i32 : i32, i32
  }
  func.func @transform_8(%arg0: i32) -> (i32, i32) {
    %c0_i32 = arith.constant 0 : i32
    %c0_i32_0 = arith.constant 0 : i32
    return %arg0, %c0_i32 : i32, i32
  }
}

module attributes {stable_mosaic.version = 11 : i64} {
  func.func @_adaptive_modulator_kernel(%arg0: i32, %arg1: memref<24x32xf32, #tpu.memory_space<vmem>>, %arg2: memref<32x16xf32, #tpu.memory_space<vmem>>, %arg3: memref<1x16xf32, #tpu.memory_space<vmem>>, %arg4: memref<16x32xf32, #tpu.memory_space<vmem>>, %arg5: memref<1x32xf32, #tpu.memory_space<vmem>>, %arg6: memref<16x32xf32, #tpu.memory_space<vmem>>, %arg7: memref<1x32xf32, #tpu.memory_space<vmem>>, %arg8: memref<24x32xf32, #tpu.memory_space<vmem>>, %arg9: memref<24x32xf32, #tpu.memory_space<vmem>>) attributes {dimension_semantics = [#tpu.dimension_semantics<parallel>], iteration_bounds = array<i64: 1>, scalar_prefetch = 0 : i64, scratch_operands = 0 : i64, tpu.core_type = #tpu.core_type<tc>, window_params = [{transform_indices = @transform_0, window_bounds = array<i64: 24, 32>}, {pipeline_mode = #tpu.pipeline_mode<synchronous>, transform_indices = @transform_1, window_bounds = array<i64: 32, 16>}, {pipeline_mode = #tpu.pipeline_mode<synchronous>, transform_indices = @transform_2, window_bounds = array<i64: 1, 16>}, {pipeline_mode = #tpu.pipeline_mode<synchronous>, transform_indices = @transform_3, window_bounds = array<i64: 16, 32>}, {pipeline_mode = #tpu.pipeline_mode<synchronous>, transform_indices = @transform_4, window_bounds = array<i64: 1, 32>}, {pipeline_mode = #tpu.pipeline_mode<synchronous>, transform_indices = @transform_5, window_bounds = array<i64: 16, 32>}, {pipeline_mode = #tpu.pipeline_mode<synchronous>, transform_indices = @transform_6, window_bounds = array<i64: 1, 32>}, {transform_indices = @transform_7, window_bounds = array<i64: 24, 32>}, {transform_indices = @transform_8, window_bounds = array<i64: 24, 32>}]} {
    %c0 = arith.constant 0 : index
    %c0_0 = arith.constant 0 : index
    %0 = vector.load %arg1[%c0, %c0_0] : memref<24x32xf32, #tpu.memory_space<vmem>>, vector<24x32xf32>
    %c0_1 = arith.constant 0 : index
    %c0_2 = arith.constant 0 : index
    %1 = vector.load %arg2[%c0_1, %c0_2] : memref<32x16xf32, #tpu.memory_space<vmem>>, vector<32x16xf32>
    %cst = arith.constant dense<0.000000e+00> : vector<24x16xf32>
    %2 = tpu.matmul %0, %1, %cst {dimension_numbers = #tpu.dot_dimension_numbers<[1], [0], [0], [1], [0, 0, 1, 1], [], []>} : vector<24x32xf32>, vector<32x16xf32>, vector<24x16xf32> -> vector<24x16xf32>
    %c0_3 = arith.constant 0 : index
    %c0_4 = arith.constant 0 : index
    %3 = vector.load %arg3[%c0_3, %c0_4] : memref<1x16xf32, #tpu.memory_space<vmem>>, vector<1x16xf32>
    %4 = vector.broadcast %3 : vector<1x16xf32> to vector<24x16xf32>
    %5 = arith.addf %2, %4 : vector<24x16xf32>
    %cst_5 = arith.constant 5.000000e-01 : f32
    %6 = vector.broadcast %cst_5 : f32 to vector<24x16xf32>
    %7 = arith.mulf %6, %5 : vector<24x16xf32>
    %8 = arith.mulf %5, %5 : vector<24x16xf32>
    %9 = arith.mulf %8, %5 : vector<24x16xf32>
    %cst_6 = arith.constant 4.471500e-02 : f32
    %10 = vector.broadcast %cst_6 : f32 to vector<24x16xf32>
    %11 = arith.mulf %10, %9 : vector<24x16xf32>
    %12 = arith.addf %5, %11 : vector<24x16xf32>
    %cst_7 = arith.constant 0.797884583 : f32
    %13 = vector.broadcast %cst_7 : f32 to vector<24x16xf32>
    %14 = arith.mulf %13, %12 : vector<24x16xf32>
    %15 = math.tanh %14 : vector<24x16xf32>
    %cst_8 = arith.constant 1.000000e+00 : f32
    %16 = vector.broadcast %cst_8 : f32 to vector<24x16xf32>
    %17 = arith.addf %16, %15 : vector<24x16xf32>
    %18 = arith.mulf %7, %17 : vector<24x16xf32>
    %c0_9 = arith.constant 0 : index
    %c0_10 = arith.constant 0 : index
    %19 = vector.load %arg4[%c0_9, %c0_10] : memref<16x32xf32, #tpu.memory_space<vmem>>, vector<16x32xf32>
    %cst_11 = arith.constant dense<0.000000e+00> : vector<24x32xf32>
    %20 = tpu.matmul %18, %19, %cst_11 {dimension_numbers = #tpu.dot_dimension_numbers<[1], [0], [0], [1], [0, 0, 1, 1], [], []>} : vector<24x16xf32>, vector<16x32xf32>, vector<24x32xf32> -> vector<24x32xf32>
    %c0_12 = arith.constant 0 : index
    %c0_13 = arith.constant 0 : index
    %21 = vector.load %arg6[%c0_12, %c0_13] : memref<16x32xf32, #tpu.memory_space<vmem>>, vector<16x32xf32>
    %cst_14 = arith.constant dense<0.000000e+00> : vector<24x32xf32>
    %22 = tpu.matmul %18, %21, %cst_14 {dimension_numbers = #tpu.dot_dimension_numbers<[1], [0], [0], [1], [0, 0, 1, 1], [], []>} : vector<24x16xf32>, vector<16x32xf32>, vector<24x32xf32> -> vector<24x32xf32>
    %c0_15 = arith.constant 0 : index
    %c0_16 = arith.constant 0 : index
    %23 = vector.load %arg5[%c0_15, %c0_16] : memref<1x32xf32, #tpu.memory_space<vmem>>, vector<1x32xf32>
    %24 = vector.broadcast %23 : vector<1x32xf32> to vector<24x32xf32>
    %25 = arith.addf %20, %24 : vector<24x32xf32>
    %c0_17 = arith.constant 0 : index
    %c0_18 = arith.constant 0 : index
    %26 = vector.load %arg8[%c0_17, %c0_18] : memref<24x32xf32, #tpu.memory_space<vmem>>, vector<24x32xf32>
    tpu.vector_store %arg8[%c0_17, %c0_18], %25 {strides = array<i32>} : memref<24x32xf32, #tpu.memory_space<vmem>>, vector<24x32xf32>,
    %c0_19 = arith.constant 0 : index
    %c0_20 = arith.constant 0 : index
    %27 = vector.load %arg7[%c0_19, %c0_20] : memref<1x32xf32, #tpu.memory_space<vmem>>, vector<1x32xf32>
    %28 = vector.broadcast %27 : vector<1x32xf32> to vector<24x32xf32>
    %29 = arith.addf %22, %28 : vector<24x32xf32>
    %c0_21 = arith.constant 0 : index
    %c0_22 = arith.constant 0 : index
    %30 = vector.load %arg9[%c0_21, %c0_22] : memref<24x32xf32, #tpu.memory_space<vmem>>, vector<24x32xf32>
    tpu.vector_store %arg9[%c0_21, %c0_22], %29 {strides = array<i32>} : memref<24x32xf32, #tpu.memory_space<vmem>>, vector<24x32xf32>,
    return
  }
  func.func @transform_0(%arg0: i32) -> (i32, i32) {
    %c0_i32 = arith.constant 0 : i32
    %c0_i32_0 = arith.constant 0 : i32
    return %arg0, %c0_i32 : i32, i32
  }
  func.func @transform_1(%arg0: i32) -> (i32, i32) {
    %c0_i32 = arith.constant 0 : i32
    %c0_i32_0 = arith.constant 0 : i32
    %c0_i32_1 = arith.constant 0 : i32
    return %c0_i32, %c0_i32_0 : i32, i32
  }
  func.func @transform_2(%arg0: i32) -> (i32, i32) {
    %c0_i32 = arith.constant 0 : i32
    %c0_i32_0 = arith.constant 0 : i32
    %c0_i32_1 = arith.constant 0 : i32
    return %c0_i32, %c0_i32_0 : i32, i32
  }
  func.func @transform_3(%arg0: i32) -> (i32, i32) {
    %c0_i32 = arith.constant 0 : i32
    %c0_i32_0 = arith.constant 0 : i32
    %c0_i32_1 = arith.constant 0 : i32
    return %c0_i32, %c0_i32_0 : i32, i32
  }
  func.func @transform_4(%arg0: i32) -> (i32, i32) {
    %c0_i32 = arith.constant 0 : i32
    %c0_i32_0 = arith.constant 0 : i32
    %c0_i32_1 = arith.constant 0 : i32
    return %c0_i32, %c0_i32_0 : i32, i32
  }
  func.func @transform_5(%arg0: i32) -> (i32, i32) {
    %c0_i32 = arith.constant 0 : i32
    %c0_i32_0 = arith.constant 0 : i32
    %c0_i32_1 = arith.constant 0 : i32
    return %c0_i32, %c0_i32_0 : i32, i32
  }
  func.func @transform_6(%arg0: i32) -> (i32, i32) {
    %c0_i32 = arith.constant 0 : i32
    %c0_i32_0 = arith.constant 0 : i32
    %c0_i32_1 = arith.constant 0 : i32
    return %c0_i32, %c0_i32_0 : i32, i32
  }
  func.func @transform_7(%arg0: i32) -> (i32, i32) {
    %c0_i32 = arith.constant 0 : i32
    %c0_i32_0 = arith.constant 0 : i32
    return %arg0, %c0_i32 : i32, i32
  }
  func.func @transform_8(%arg0: i32) -> (i32, i32) {
    %c0_i32 = arith.constant 0 : i32
    %c0_i32_0 = arith.constant 0 : i32
    return %arg0, %c0_i32 : i32, i32
  }
}

</mosaic_0001>

<bundles_post_ra>
// kernel: _adaptive_modulator_impl.1
= control target key start
LH: loop header
LB: loop body
LE: loop exit
PB: predicated region body
PF: predicated region fallthrough
CT: control target
= control target key end

     0   :  { %v456_v0 = vmov 0.0|0.0   ;;  %vm457_vm0 = vmmov 0   ;;  %v458_v4 = vmov 0.0   ;;  %vm42_vm1 = vcmask 261120   ;;  %s597_s1 = inlined_call_operand.vmem [shape: f32[32,16], index: 1, kind: input, shape index: {}]   ;;  %s598_s0 = inlined_call_operand.vmem [shape: f32[18,32], index: 0, kind: input, shape index: {}]   ;;  %s599_s3 = inlined_call_operand.vmem [shape: f32[16,32], index: 3, kind: input, shape index: {}]   ;;  %s600_s2 = inlined_call_operand.vmem [shape: f32[1,16], index: 2, kind: input, shape index: {}]   ;;  %s601_s5 = inlined_call_operand.vmem [shape: f32[16,32], index: 5, kind: input, shape index: {}]   ;;  %s602_s4 = inlined_call_operand.vmem [shape: f32[1,32], index: 4, kind: input, shape index: {}]   ;;  %s603_s7 = inlined_call_operand.vmem [shape: f32[18,32], index: 7, kind: output, shape index: {0}]   ;;  %s604_s6 = inlined_call_operand.vmem [shape: f32[1,32], index: 6, kind: input, shape index: {}]   ;;  %s605_s8 = inlined_call_operand.vmem [shape: f32[18,32], index: 8, kind: output, shape index: {1}]  }
   0x1   :  { %433 = vmatprep.subr.bf16.mxu0 %v456_v0  ;;  %v31_v1 = vld [vmem:[%s597_s1] sm:$0xff]  ;;  %v32_v2 = vld [vmem:[%s597_s1 + $0x8] sm:$0xff]  ;;  %v33_v3 = vld [vmem:[%s597_s1 + $0x10] sm:$0xff]  ;;  %398 = vmatprep.mubr.msk.f32.mxu0 %vm457_vm0, %v458_v4  ;;  %vm170_vm2 = vcmask 130048  }
   0x2   :  { %v434_v5 = vpack.c.bf16 %v32_v2, %v31_v1  ;;  %v34_v6 = vld [vmem:[%s597_s1 + $0x18] sm:$0xff]  ;;  %445 = vmatprep.subr.bf16.mxu1 %v456_v0  ;;  %414 = vmatprep.mubr.msk.f32.mxu1 %vm457_vm0, %v458_v4  ;;  %v28_v8 = vld [vmem:[%s598_s0] sm:$0xff]  ;;  %v29_v9 = vld [vmem:[%s598_s0 + $0x8] sm:$0xff] }
   0x3   :  { %v437_v7 = vpack.c.bf16 %v34_v6, %v33_v3  ;;  %v30_v10 = vld [vmem:[%s598_s0 + $0x10] sm:$0xff]  ;;  %v159_v11 = vld [vmem:[%s599_s3] sm:$0xff]  ;;  %v160_v12 = vld [vmem:[%s599_s3 + $0x8] sm:$0xff] }
   0x4   :  { %435 = vmatpush3.bf16.msra.mxu0 %v434_v5  ;;  %v440_v13 = vpack.c.bf16 %v160_v12, %v159_v11  ;;  %v361_v14 = vld [vmem:[%s600_s2] ss:$0 sm:$0xff]  ;;  %v162_v44 = vld [vmem:[%s601_s5 + $0x8] sm:$0xff] }
   0x5   :  { %436 = vmatprep.subr.bf16.mxu0 %v456_v0  ;;  %v161_v43 = vld [vmem:[%s601_s5] sm:$0xff] }
   0x6   :  { %446 = vmatpush3.bf16.msra.mxu1 %v440_v13  ;;  %v443_v48 = vpack.c.bf16 %v162_v44, %v161_v43  ;;  %v365_v54 = vld [vmem:[%s602_s4] ss:$0 sm:$0xff] }
   0x7   :  { %442 = vmatprep.subr.bf16.mxu1 %v456_v0 }
   0x8   :  { %438 = vmatpush3.bf16.msra.mxu0 %v437_v7 }
   0x9   :  { %439 = vmatprep.subr.bf16.mxu0 %v456_v0  ;;  %v369_v0 = vld [vmem:[%s604_s6] ss:$0 sm:$0xff] }
   0xb   :  { %399 = vmatmul.mubr.msk.f32.vlgmr.msra.gmra.mrb[0].mxu0 %vm42_vm1, %v28_v8 }
   0xc   :  { %401 = vmatprep.mubr.msk.f32.mxu0 %vm457_vm0, %v458_v4  ;;  %441 = vmatpush3.bf16.msra.mxu0 %v440_v13 }
   0xf   :  { %402 = vmatmul.mubr.msk.f32.gmra.mrb[2].mxu0 %vm42_vm1, %v29_v9 }
  0x10   :  { %404 = vmatprep.mubr.msk.f32.mxu0 %vm457_vm0, %v458_v4 }
  0x13   :  { %405 = vmatmul.mubr.msk.f32.gmra.mrb[4].mxu0 %vm42_vm1, %v30_v10 }
  0x14   :  { %411 = vmatprep.mubr.msk.f32.mxu0 %vm457_vm0, %v458_v4 }
  0xde   :  { %v118_v15 = vpop.f32.mrb[0].mxu0 }
  0xdf   :  { %v119_v16 = vadd.f32 %v361_v14, %v118_v15  ;;  %v400_v17 = vpop.f32.mrb[1].mxu0 }
  0xe1   :  { %v135_v18 = vmul.f32 %v119_v16, %v119_v16  ;;  %v132_v40 = vmul.f32 0.5, %v119_v16 }
  0xe2   :  { %v123_v19 = vpop.f32.mrb[2].mxu0 }
  0xe3   :  { %v138_v20 = vmul.f32 %v135_v18, %v119_v16  ;;  %v124_v21 = vadd.f32 %v361_v14, %v123_v19  ;;  %v403_v22 = vpop.f32.mrb[3].mxu0 }
  0xe5   :  { %v141_v23 = vmul.f32 0.044715, %v138_v20  ;;  %v136_v24 = vmul.f32 %v124_v21, %v124_v21  ;;  %v133_v46 = vmul.f32 0.5, %v124_v21 }
  0xe6   :  { %v128_v25 = vpop.f32.mrb[4].mxu0 }
  0xe7   :  { %v144_v26 = vadd.f32 %v141_v23, %v119_v16  ;;  %v139_v27 = vmul.f32 %v136_v24, %v124_v21  ;;  %v129_v28 = vadd.f32 %v361_v14, %v128_v25  ;;  %v406_v29 = vpop.f32.mrb[5].mxu0 }
  0xe9   :  { %v147_v30 = vmul.f32 0.7978846, %v144_v26  ;;  %v142_v31 = vmul.f32 0.044715, %v139_v27  ;;  %v137_v32 = vmul.f32 %v129_v28, %v129_v28  ;;  %v134_v51 = vmul.f32 0.5, %v129_v28 }
  0xeb   :  { %450 = vtanh.f32 %v147_v30  ;;  %v145_v33 = vadd.f32 %v142_v31, %v124_v21  ;;  %v140_v34 = vmul.f32 %v137_v32, %v129_v28 }
  0xed   :  { %v148_v35 = vmul.f32 0.7978846, %v145_v33  ;;  %v143_v36 = vmul.f32 0.044715, %v140_v34 }
  0xef   :  { %452 = vtanh.f32 %v148_v35  ;;  %v146_v37 = vadd.f32 %v143_v36, %v129_v28 }
  0xf1   :  { %v149_v38 = vmul.f32 0.7978846, %v146_v37 }
  0xf3   :  { %454 = vtanh.f32 %v149_v38 }
  0xf5   :  { %v451_v39 = vpop.eup %450 }
  0xf6   :  { %v153_v41 = vadd.f32 1.0, %v451_v39 }
  0xf8   :  { %v156_v42 = vmul.f32 %v153_v41, %v132_v40 }
  0xf9   :  { %v453_v45 = vpop.eup %452 }
  0xfa   :  { %412 = vmatmul.mubr.msk.f32.vlgmr.msra.gmra.mrb[6].mxu0 %vm170_vm2, %v156_v42  ;;  %v154_v47 = vadd.f32 1.0, %v453_v45 }
  0xfc   :  { %v157_v49 = vmul.f32 %v154_v47, %v133_v46 }
  0xfd   :  { %v455_v50 = vpop.eup %454 }
  0xfe   :  { %415 = vmatmul.mubr.msk.f32.vlgmr.msra.gmra.mrb[0].mxu1 %vm170_vm2, %v157_v49  ;;  %v155_v52 = vadd.f32 1.0, %v455_v50 }
  0xff   :  { %444 = vmatpush3.bf16.msra.mxu1 %v443_v48  ;;  %417 = vmatprep.mubr.msk.f32.mxu1 %vm457_vm0, %v458_v4 }
 0x100   :  { %v158_v53 = vmul.f32 %v155_v52, %v134_v51 }
 0x102   :  { %418 = vmatmul.mubr.msk.f32.gmra.mrb[2].mxu1 %vm170_vm2, %v158_v53 }
 0x103   :  { %424 = vmatprep.mubr.msk.f32.mxu1 %vm457_vm0, %v458_v4 }
 0x106   :  { %425 = vmatmul.mubr.msk.f32.vlgmr.msra.gmra.mrb[4].mxu1 %vm170_vm2, %v156_v42 }
 0x107   :  { %427 = vmatprep.mubr.msk.f32.mxu1 %vm457_vm0, %v458_v4 }
 0x10a   :  { %428 = vmatmul.mubr.msk.f32.gmra.mrb[6].mxu1 %vm170_vm2, %v157_v49 }
 0x10b   :  { %430 = vmatprep.mubr.msk.f32.mxu1 %vm457_vm0, %v458_v4 }
 0x10e   :  { %431 = vmatmul.mubr.msk.f32.gmra.mrb[8].mxu1 %vm170_vm2, %v158_v53 }
 0x1cd   :  { %v246_v55 = vpop.f32.mrb[6].mxu0 }
 0x1ce   :  { %v247_v56 = vadd.f32 %v365_v54, %v246_v55  ;;  %v413_v57 = vpop.f32.mrb[7].mxu0 }
 0x1d0   :  { %260 = vst.msk [vmem:[%s603_s7] sm:$0xff] %vm42_vm1, %v247_v56 }
 0x1d1   :  { %v251_v58 = vpop.f32.mrb[0].mxu1 }
 0x1d2   :  { %v252_v59 = vadd.f32 %v365_v54, %v251_v58  ;;  %v416_v60 = vpop.f32.mrb[1].mxu1 }
 0x1d4   :  { %261 = vst.msk [vmem:[%s603_s7 + $0x8] sm:$0xff] %vm42_vm1, %v252_v59 }
 0x1d5   :  { %v256_v61 = vpop.f32.mrb[2].mxu1 }
 0x1d6   :  { %v257_v62 = vadd.f32 %v365_v54, %v256_v61  ;;  %v419_v63 = vpop.f32.mrb[3].mxu1 }
 0x1d8   :  { %262 = vst.msk [vmem:[%s603_s7 + $0x10] sm:$0xff] %vm42_vm1, %v257_v62 }
 0x1d9   :  { %v336_v1 = vpop.f32.mrb[4].mxu1 }
 0x1da   :  { %v337_v2 = vadd.f32 %v369_v0, %v336_v1  ;;  %v426_v3 = vpop.f32.mrb[5].mxu1 }
 0x1dc   :  { %350 = vst.msk [vmem:[%s605_s8] sm:$0xff] %vm42_vm1, %v337_v2 }
 0x1dd   :  { %v341_v4 = vpop.f32.mrb[6].mxu1 }
 0x1de   :  { %v342_v5 = vadd.f32 %v369_v0, %v341_v4  ;;  %v429_v6 = vpop.f32.mrb[7].mxu1 }
 0x1e0   :  { %351 = vst.msk [vmem:[%s605_s8 + $0x8] sm:$0xff] %vm42_vm1, %v342_v5 }
 0x1e1   :  { %v346_v7 = vpop.f32.mrb[8].mxu1 }
 0x1e2   :  { %v347_v8 = vadd.f32 %v369_v0, %v346_v7  ;;  %v432_v9 = vpop.f32.mrb[9].mxu1 }
 0x1e4   :  { %352 = vst.msk [vmem:[%s605_s8 + $0x10] sm:$0xff] %vm42_vm1, %v347_v8 }

// kernel: _adaptive_modulator_impl.1
= control target key start
LH: loop header
LB: loop body
LE: loop exit
PB: predicated region body
PF: predicated region fallthrough
CT: control target
= control target key end

     0   :  { %v456_v0 = vmov 0.0|0.0   ;;  %vm457_vm0 = vmmov 0   ;;  %v458_v4 = vmov 0.0   ;;  %vm42_vm1 = vcmask 261120   ;;  %s597_s1 = inlined_call_operand.vmem [shape: f32[32,16], index: 1, kind: input, shape index: {}]   ;;  %s598_s0 = inlined_call_operand.vmem [shape: f32[18,32], index: 0, kind: input, shape index: {}]   ;;  %s599_s3 = inlined_call_operand.vmem [shape: f32[16,32], index: 3, kind: input, shape index: {}]   ;;  %s600_s2 = inlined_call_operand.vmem [shape: f32[1,16], index: 2, kind: input, shape index: {}]   ;;  %s601_s5 = inlined_call_operand.vmem [shape: f32[16,32], index: 5, kind: input, shape index: {}]   ;;  %s602_s4 = inlined_call_operand.vmem [shape: f32[1,32], index: 4, kind: input, shape index: {}]   ;;  %s603_s7 = inlined_call_operand.vmem [shape: f32[18,32], index: 7, kind: output, shape index: {0}]   ;;  %s604_s6 = inlined_call_operand.vmem [shape: f32[1,32], index: 6, kind: input, shape index: {}]   ;;  %s605_s8 = inlined_call_operand.vmem [shape: f32[18,32], index: 8, kind: output, shape index: {1}]  }
   0x1   :  { %433 = vmatprep.subr.bf16.mxu0 %v456_v0  ;;  %v31_v1 = vld [vmem:[%s597_s1] sm:$0xff]  ;;  %v32_v2 = vld [vmem:[%s597_s1 + $0x8] sm:$0xff]  ;;  %v33_v3 = vld [vmem:[%s597_s1 + $0x10] sm:$0xff]  ;;  %398 = vmatprep.mubr.msk.f32.mxu0 %vm457_vm0, %v458_v4  ;;  %vm170_vm2 = vcmask 130048  }
   0x2   :  { %v434_v5 = vpack.c.bf16 %v32_v2, %v31_v1  ;;  %v34_v6 = vld [vmem:[%s597_s1 + $0x18] sm:$0xff]  ;;  %445 = vmatprep.subr.bf16.mxu1 %v456_v0  ;;  %414 = vmatprep.mubr.msk.f32.mxu1 %vm457_vm0, %v458_v4  ;;  %v28_v8 = vld [vmem:[%s598_s0] sm:$0xff]  ;;  %v29_v9 = vld [vmem:[%s598_s0 + $0x8] sm:$0xff] }
   0x3   :  { %v437_v7 = vpack.c.bf16 %v34_v6, %v33_v3  ;;  %v30_v10 = vld [vmem:[%s598_s0 + $0x10] sm:$0xff]  ;;  %v159_v11 = vld [vmem:[%s599_s3] sm:$0xff]  ;;  %v160_v12 = vld [vmem:[%s599_s3 + $0x8] sm:$0xff] }
   0x4   :  { %435 = vmatpush3.bf16.msra.mxu0 %v434_v5  ;;  %v440_v13 = vpack.c.bf16 %v160_v12, %v159_v11  ;;  %v361_v14 = vld [vmem:[%s600_s2] ss:$0 sm:$0xff]  ;;  %v162_v44 = vld [vmem:[%s601_s5 + $0x8] sm:$0xff] }
   0x5   :  { %436 = vmatprep.subr.bf16.mxu0 %v456_v0  ;;  %v161_v43 = vld [vmem:[%s601_s5] sm:$0xff] }
   0x6   :  { %446 = vmatpush3.bf16.msra.mxu1 %v440_v13  ;;  %v443_v48 = vpack.c.bf16 %v162_v44, %v161_v43  ;;  %v365_v54 = vld [vmem:[%s602_s4] ss:$0 sm:$0xff] }
   0x7   :  { %442 = vmatprep.subr.bf16.mxu1 %v456_v0 }
   0x8   :  { %438 = vmatpush3.bf16.msra.mxu0 %v437_v7 }
   0x9   :  { %439 = vmatprep.subr.bf16.mxu0 %v456_v0  ;;  %v369_v0 = vld [vmem:[%s604_s6] ss:$0 sm:$0xff] }
   0xb   :  { %399 = vmatmul.mubr.msk.f32.vlgmr.msra.gmra.mrb[0].mxu0 %vm42_vm1, %v28_v8 }
   0xc   :  { %401 = vmatprep.mubr.msk.f32.mxu0 %vm457_vm0, %v458_v4  ;;  %441 = vmatpush3.bf16.msra.mxu0 %v440_v13 }
   0xf   :  { %402 = vmatmul.mubr.msk.f32.gmra.mrb[2].mxu0 %vm42_vm1, %v29_v9 }
  0x10   :  { %404 = vmatprep.mubr.msk.f32.mxu0 %vm457_vm0, %v458_v4 }
  0x13   :  { %405 = vmatmul.mubr.msk.f32.gmra.mrb[4].mxu0 %vm42_vm1, %v30_v10 }
  0x14   :  { %411 = vmatprep.mubr.msk.f32.mxu0 %vm457_vm0, %v458_v4 }
  0xde   :  { %v118_v15 = vpop.f32.mrb[0].mxu0 }
  0xdf   :  { %v119_v16 = vadd.f32 %v361_v14, %v118_v15  ;;  %v400_v17 = vpop.f32.mrb[1].mxu0 }
  0xe1   :  { %v135_v18 = vmul.f32 %v119_v16, %v119_v16  ;;  %v132_v40 = vmul.f32 0.5, %v119_v16 }
  0xe2   :  { %v123_v19 = vpop.f32.mrb[2].mxu0 }
  0xe3   :  { %v138_v20 = vmul.f32 %v135_v18, %v119_v16  ;;  %v124_v21 = vadd.f32 %v361_v14, %v123_v19  ;;  %v403_v22 = vpop.f32.mrb[3].mxu0 }
  0xe5   :  { %v141_v23 = vmul.f32 0.044715, %v138_v20  ;;  %v136_v24 = vmul.f32 %v124_v21, %v124_v21  ;;  %v133_v46 = vmul.f32 0.5, %v124_v21 }
  0xe6   :  { %v128_v25 = vpop.f32.mrb[4].mxu0 }
  0xe7   :  { %v144_v26 = vadd.f32 %v141_v23, %v119_v16  ;;  %v139_v27 = vmul.f32 %v136_v24, %v124_v21  ;;  %v129_v28 = vadd.f32 %v361_v14, %v128_v25  ;;  %v406_v29 = vpop.f32.mrb[5].mxu0 }
  0xe9   :  { %v147_v30 = vmul.f32 0.7978846, %v144_v26  ;;  %v142_v31 = vmul.f32 0.044715, %v139_v27  ;;  %v137_v32 = vmul.f32 %v129_v28, %v129_v28  ;;  %v134_v51 = vmul.f32 0.5, %v129_v28 }
  0xeb   :  { %450 = vtanh.f32 %v147_v30  ;;  %v145_v33 = vadd.f32 %v142_v31, %v124_v21  ;;  %v140_v34 = vmul.f32 %v137_v32, %v129_v28 }
  0xed   :  { %v148_v35 = vmul.f32 0.7978846, %v145_v33  ;;  %v143_v36 = vmul.f32 0.044715, %v140_v34 }
  0xef   :  { %452 = vtanh.f32 %v148_v35  ;;  %v146_v37 = vadd.f32 %v143_v36, %v129_v28 }
  0xf1   :  { %v149_v38 = vmul.f32 0.7978846, %v146_v37 }
  0xf3   :  { %454 = vtanh.f32 %v149_v38 }
  0xf5   :  { %v451_v39 = vpop.eup %450 }
  0xf6   :  { %v153_v41 = vadd.f32 1.0, %v451_v39 }
  0xf8   :  { %v156_v42 = vmul.f32 %v153_v41, %v132_v40 }
  0xf9   :  { %v453_v45 = vpop.eup %452 }
  0xfa   :  { %412 = vmatmul.mubr.msk.f32.vlgmr.msra.gmra.mrb[6].mxu0 %vm170_vm2, %v156_v42  ;;  %v154_v47 = vadd.f32 1.0, %v453_v45 }
  0xfc   :  { %v157_v49 = vmul.f32 %v154_v47, %v133_v46 }
  0xfd   :  { %v455_v50 = vpop.eup %454 }
  0xfe   :  { %415 = vmatmul.mubr.msk.f32.vlgmr.msra.gmra.mrb[0].mxu1 %vm170_vm2, %v157_v49  ;;  %v155_v52 = vadd.f32 1.0, %v455_v50 }
  0xff   :  { %444 = vmatpush3.bf16.msra.mxu1 %v443_v48  ;;  %417 = vmatprep.mubr.msk.f32.mxu1 %vm457_vm0, %v458_v4 }
 0x100   :  { %v158_v53 = vmul.f32 %v155_v52, %v134_v51 }
 0x102   :  { %418 = vmatmul.mubr.msk.f32.gmra.mrb[2].mxu1 %vm170_vm2, %v158_v53 }
 0x103   :  { %424 = vmatprep.mubr.msk.f32.mxu1 %vm457_vm0, %v458_v4 }
 0x106   :  { %425 = vmatmul.mubr.msk.f32.vlgmr.msra.gmra.mrb[4].mxu1 %vm170_vm2, %v156_v42 }
 0x107   :  { %427 = vmatprep.mubr.msk.f32.mxu1 %vm457_vm0, %v458_v4 }
 0x10a   :  { %428 = vmatmul.mubr.msk.f32.gmra.mrb[6].mxu1 %vm170_vm2, %v157_v49 }
 0x10b   :  { %430 = vmatprep.mubr.msk.f32.mxu1 %vm457_vm0, %v458_v4 }
 0x10e   :  { %431 = vmatmul.mubr.msk.f32.gmra.mrb[8].mxu1 %vm170_vm2, %v158_v53 }
 0x1cd   :  { %v246_v55 = vpop.f32.mrb[6].mxu0 }
 0x1ce   :  { %v247_v56 = vadd.f32 %v365_v54, %v246_v55  ;;  %v413_v57 = vpop.f32.mrb[7].mxu0 }
 0x1d0   :  { %260 = vst.msk [vmem:[%s603_s7] sm:$0xff] %vm42_vm1, %v247_v56 }
 0x1d1   :  { %v251_v58 = vpop.f32.mrb[0].mxu1 }
 0x1d2   :  { %v252_v59 = vadd.f32 %v365_v54, %v251_v58  ;;  %v416_v60 = vpop.f32.mrb[1].mxu1 }
 0x1d4   :  { %261 = vst.msk [vmem:[%s603_s7 + $0x8] sm:$0xff] %vm42_vm1, %v252_v59 }
 0x1d5   :  { %v256_v61 = vpop.f32.mrb[2].mxu1 }
 0x1d6   :  { %v257_v62 = vadd.f32 %v365_v54, %v256_v61  ;;  %v419_v63 = vpop.f32.mrb[3].mxu1 }
 0x1d8   :  { %262 = vst.msk [vmem:[%s603_s7 + $0x10] sm:$0xff] %vm42_vm1, %v257_v62 }
 0x1d9   :  { %v336_v1 = vpop.f32.mrb[4].mxu1 }
 0x1da   :  { %v337_v2 = vadd.f32 %v369_v0, %v336_v1  ;;  %v426_v3 = vpop.f32.mrb[5].mxu1 }
 0x1dc   :  { %350 = vst.msk [vmem:[%s605_s8] sm:$0xff] %vm42_vm1, %v337_v2 }
 0x1dd   :  { %v341_v4 = vpop.f32.mrb[6].mxu1 }
 0x1de   :  { %v342_v5 = vadd.f32 %v369_v0, %v341_v4  ;;  %v429_v6 = vpop.f32.mrb[7].mxu1 }
 0x1e0   :  { %351 = vst.msk [vmem:[%s605_s8 + $0x8] sm:$0xff] %vm42_vm1, %v342_v5 }
 0x1e1   :  { %v346_v7 = vpop.f32.mrb[8].mxu1 }
 0x1e2   :  { %v347_v8 = vadd.f32 %v369_v0, %v346_v7  ;;  %v432_v9 = vpop.f32.mrb[9].mxu1 }
 0x1e4   :  { %352 = vst.msk [vmem:[%s605_s8 + $0x10] sm:$0xff] %vm42_vm1, %v347_v8 }

</bundles_post_ra>
